<compile_context>
chip_gen: v5e
topology: v5e:2x2
jax: 0.10.0
libtpu: 0.0.40
codegen_flags: <defaults>
</compile_context>

<pallas_src>
import jax
import jax.numpy as jnp
from jax.experimental import pallas as pl
from jax.experimental.pallas import tpu as pltpu


def _embed_kernel(x_ref, w_ref, b_ref, o_ref):
    # x_ref: (TR, Kp) bf16   w_ref: (Kp, Dp) bf16   b_ref: (1, Dp) f32
    # o_ref: (TR, Dp) out_dtype   (Dp is always a multiple of 128)
    acc = jnp.dot(x_ref[...], w_ref[...],
                  preferred_element_type=jnp.float32)      # MXU, f32 accumulate
    o_ref[...] = (acc + b_ref[...]).astype(o_ref.dtype)


def _round_up(a: int, b: int) -> int:
    return (a + b - 1) // b * b


def _pick_row_tile(rows: int, bytes_per_row: int, resident_bytes: int, *,
                   max_row_tile: int, vmem_budget: int) -> int:
    """Largest 16-aligned row tile whose double-buffered blocks fit the VMEM budget."""
    avail = max(vmem_budget - resident_bytes, 16 * bytes_per_row)
    tr = avail // max(bytes_per_row, 1)
    tr = min(tr, max_row_tile)
    tr = max(16, (tr // 16) * 16)          # bf16 native sublane tile is (16, 128)
    tr = min(tr, _round_up(rows, 16))      # no point exceeding the array itself
    return tr


def contiguous_embed(x, weight, bias, *, patch_size=1, stride=1, kernel_size=None,
                     pad=0, flatten=True, compute_dtype=jnp.bfloat16,
                     out_dtype=jnp.bfloat16, max_row_tile=4096,
                     vmem_budget_bytes=24 * 1024 * 1024):
    """Forward of ContiguousEmbed (normalization=None).

    x      : (B, C, H, W) float32
    weight : (D, K) torch nn.Conv2d weight flattened, K = C*k*k
    bias   : (D,)
    returns: (B, N, D) if flatten else (B, D, H', W')
    """
    ks = patch_size if kernel_size is None else kernel_size
    if ks != stride or pad != 0:
        # TODO(synk): general overlapping / padded Conv2d patching (im2col) not implemented.
        raise NotImplementedError(
            "Only non-overlapping, unpadded patching (kernel_size == stride, pad == 0).")

    B, C, H, W = x.shape
    p = ks
    Hp, Wp = H // p, W // p
    N = Hp * Wp
    K = C * p * p
    D = weight.shape[0]
    total = B * N

    # img2patch: (B,C,H,W) -> (B*N, K), ordered (C, ph, pw) to match the torch
    # conv-weight flattening.  Cast to bf16 FIRST so any materialized
    # intermediate is 2 B/elem; allow_input_fusion below lets XLA pull the
    # transpose/cast into the Pallas input DMA when possible.
    xc = x.astype(compute_dtype)
    patches = xc.reshape(B, C, Hp, p, Wp, p).transpose(0, 2, 4, 1, 3, 5)
    patches = patches.reshape(total, K)
    w_t = weight.T.astype(compute_dtype)                     # (K, D)
    b_f32 = bias.astype(jnp.float32)

    # Lane-dense output: never leave the output last dim below 128 lanes.
    pack, col_pad = 1, 0
    if D % 128 == 0:
        Kp, Dp, Rp = K, D, total
        x_p, w_p, b_p = patches, w_t, b_f32.reshape(1, Dp)
    elif 128 % D == 0 and total % (128 // D) == 0:
        pack = 128 // D
        Kp, Dp, Rp = K * pack, D * pack, total // pack
        x_p = patches.reshape(Rp, Kp)                        # free row-major regroup
        w_p = jnp.kron(jnp.eye(pack, dtype=compute_dtype), w_t)   # block-diagonal
        b_p = jnp.tile(b_f32, pack).reshape(1, Dp)
    else:
        # Awkward D: zero-pad the weight columns to a 128 multiple; slice after.
        Dp = _round_up(D, 128)
        col_pad = Dp - D
        Kp, Rp = K, total
        x_p = patches
        w_p = jnp.pad(w_t, ((0, 0), (0, col_pad)))
        b_p = jnp.pad(b_f32, (0, col_pad)).reshape(1, Dp)

    out_itemsize = jnp.dtype(out_dtype).itemsize
    in_itemsize = jnp.dtype(compute_dtype).itemsize
    # Double-buffered activation + output blocks per row; weight/bias resident.
    bytes_per_row = 2 * Kp * in_itemsize + 2 * Dp * out_itemsize
    # TODO(synk): pipeline_mode=pl.Buffered(1) would single-buffer the constant
    # weight/bias blocks; budget conservatively assumes they are double-buffered.
    resident_bytes = 2 * Kp * Dp * in_itemsize + 2 * Dp * 4

    tr = _pick_row_tile(Rp, bytes_per_row, resident_bytes,
                        max_row_tile=max_row_tile, vmem_budget=vmem_budget_bytes)
    grid = (pl.cdiv(Rp, tr),)                # ragged last block handled by Pallas

    cost = pl.CostEstimate(
        flops=2 * total * K * D,             # useful FLOPs (no block-diag zeros)
        transcendentals=0,
        bytes_accessed=(x_p.size * x_p.dtype.itemsize
                        + w_p.size * w_p.dtype.itemsize
                        + b_p.size * b_p.dtype.itemsize
                        + Rp * Dp * out_itemsize),
    )

    out = pl.pallas_call(
        _embed_kernel,
        out_shape=jax.ShapeDtypeStruct((Rp, Dp), out_dtype),
        grid_spec=pltpu.PrefetchScalarGridSpec(
            num_scalar_prefetch=0,
            grid=grid,
            in_specs=[
                pl.BlockSpec((tr, Kp), lambda i: (i, 0)),    # row tile of activations
                pl.BlockSpec((Kp, Dp), lambda i: (0, 0)),    # weight stays resident
                pl.BlockSpec((1, Dp), lambda i: (0, 0)),     # bias stays resident
            ],
            out_specs=pl.BlockSpec((tr, Dp), lambda i: (i, 0)),
        ),
        compiler_params=pltpu.CompilerParams(
            dimension_semantics=("parallel",),
            allow_input_fusion=[True, False, False],
            vmem_limit_bytes=32 * 1024 * 1024,
        ),
        cost_estimate=cost,
    )(x_p, w_p, b_p)

    if pack > 1:
        out = out.reshape(total, D)                          # free bitcast reshape
    elif col_pad:
        out = out[:, :D]
    out = out.reshape(B, N, D)
    if not flatten:
        out = out.reshape(B, Hp, Wp, D).transpose(0, 3, 1, 2)
    return out


if __name__ == "__main__":
    # Small config consistent with the module's forward semantics.
    B, C, H, W = 2, 4, 32, 32
    patch_size = 4
    head_dim, num_heads = 8, 4
    K = C * patch_size ** 2          # 64  (in-features of the projection)
    D = head_dim * num_heads         # 32  (proj_dim)

    key = jax.random.PRNGKey(0)
    kx, kw, kb = jax.random.split(key, 3)
    x = jax.random.normal(kx, (B, C, H, W), dtype=jnp.float32)
    bound = 1.0 / jnp.sqrt(jnp.float32(K))
    weight = jax.random.uniform(kw, (D, K), jnp.float32, -bound, bound)
    bias = jax.random.uniform(kb, (D,), jnp.float32, -bound, bound)

    embed_fn = jax.jit(lambda a, w, b: contiguous_embed(
        a, w, b, patch_size=patch_size, stride=patch_size))
    out = jax.block_until_ready(embed_fn(x, weight, bias))

    # References.
    Hp = Wp = H // patch_size
    N = Hp * Wp
    patches_f32 = x.reshape(B, C, Hp, patch_size, Wp, patch_size)
    patches_f32 = patches_f32.transpose(0, 2, 4, 1, 3, 5).reshape(B, N, K)
    ref_f32 = patches_f32 @ weight.T + bias
    # bf16-input / f32-accumulate reference (matches the kernel's compute dtype).
    ref_bf16 = jnp.dot(patches_f32.astype(jnp.bfloat16).astype(jnp.float32),
                       weight.T.astype(jnp.bfloat16).astype(jnp.float32)) + bias

    assert out.shape == (B, N, D)
    assert out.dtype == jnp.bfloat16
    out_f32 = out.astype(jnp.float32)
    # bf16 output -> ~3 significant digits; tolerances reflect that.
    assert jnp.allclose(out_f32, ref_bf16, atol=1.5e-2, rtol=1.5e-2), "mismatch vs bf16-matched ref"
    assert jnp.allclose(out_f32, ref_f32, atol=6e-2, rtol=6e-2), "mismatch vs f32 ref"

    print("KERNEL_OK")
</pallas_src>

<mosaic_0001>
module attributes {stable_mosaic.version = 11 : i64} {
  func.func @_embed_kernel(%arg0: i32, %arg1: memref<32x256xbf16, #tpu.memory_space<vmem>>, %arg2: memref<256x128xbf16, #tpu.memory_space<vmem>>, %arg3: memref<1x128xf32, #tpu.memory_space<vmem>>, %arg4: memref<32x128xbf16, #tpu.memory_space<vmem>>) attributes {dimension_semantics = [#tpu.dimension_semantics<parallel>], iteration_bounds = array<i64: 1>, scalar_prefetch = 0 : i64, scratch_operands = 0 : i64, tpu.core_type = #tpu.core_type<tc>, window_params = [{transform_indices = @transform_0, window_bounds = array<i64: 32, 256>}, {pipeline_mode = #tpu.pipeline_mode<synchronous>, transform_indices = @transform_1, window_bounds = array<i64: 256, 128>}, {pipeline_mode = #tpu.pipeline_mode<synchronous>, transform_indices = @transform_2, window_bounds = array<i64: 1, 128>}, {transform_indices = @transform_3, window_bounds = array<i64: 32, 128>}]} {
    %c0 = arith.constant 0 : index
    %c0_0 = arith.constant 0 : index
    %0 = vector.load %arg1[%c0, %c0_0] : memref<32x256xbf16, #tpu.memory_space<vmem>>, vector<32x256xbf16>
    %c0_1 = arith.constant 0 : index
    %c0_2 = arith.constant 0 : index
    %1 = vector.load %arg2[%c0_1, %c0_2] : memref<256x128xbf16, #tpu.memory_space<vmem>>, vector<256x128xbf16>
    %cst = arith.constant dense<0.000000e+00> : vector<32x128xf32>
    %2 = tpu.matmul %0, %1, %cst {dimension_numbers = #tpu.dot_dimension_numbers<[1], [0], [0], [1], [0, 0, 1, 1], [], []>} : vector<32x256xbf16>, vector<256x128xbf16>, vector<32x128xf32> -> vector<32x128xf32>
    %c0_3 = arith.constant 0 : index
    %c0_4 = arith.constant 0 : index
    %3 = vector.load %arg3[%c0_3, %c0_4] : memref<1x128xf32, #tpu.memory_space<vmem>>, vector<1x128xf32>
    %4 = vector.broadcast %3 : vector<1x128xf32> to vector<32x128xf32>
    %5 = arith.addf %2, %4 : vector<32x128xf32>
    %6 = arith.truncf %5 : vector<32x128xf32> to vector<32x128xbf16>
    %c0_5 = arith.constant 0 : index
    %c0_6 = arith.constant 0 : index
    %7 = vector.load %arg4[%c0_5, %c0_6] : memref<32x128xbf16, #tpu.memory_space<vmem>>, vector<32x128xbf16>
    tpu.vector_store %arg4[%c0_5, %c0_6], %6 {strides = array<i32>} : memref<32x128xbf16, #tpu.memory_space<vmem>>, vector<32x128xbf16>,
    return
  }
  func.func @transform_0(%arg0: i32) -> (i32, i32) {
    %c0_i32 = arith.constant 0 : i32
    %c0_i32_0 = arith.constant 0 : i32
    return %arg0, %c0_i32 : i32, i32
  }
  func.func @transform_1(%arg0: i32) -> (i32, i32) {
    %c0_i32 = arith.constant 0 : i32
    %c0_i32_0 = arith.constant 0 : i32
    %c0_i32_1 = arith.constant 0 : i32
    return %c0_i32, %c0_i32_0 : i32, i32
  }
  func.func @transform_2(%arg0: i32) -> (i32, i32) {
    %c0_i32 = arith.constant 0 : i32
    %c0_i32_0 = arith.constant 0 : i32
    %c0_i32_1 = arith.constant 0 : i32
    return %c0_i32, %c0_i32_0 : i32, i32
  }
  func.func @transform_3(%arg0: i32) -> (i32, i32) {
    %c0_i32 = arith.constant 0 : i32
    %c0_i32_0 = arith.constant 0 : i32
    return %arg0, %c0_i32 : i32, i32
  }
}

</mosaic_0001>

<bundles_post_ra>
// kernel: tile.8
= control target key start
LH: loop header
LB: loop body
LE: loop exit
PB: predicated region body
PF: predicated region fallthrough
CT: control target
= control target key end

     0   :  { %s22_s0 = inlined_call_operand.vmem [shape: f32[32], index: 0, kind: input, shape index: {}]   ;;  %s23_s1 = inlined_call_operand.vmem [shape: f32[4,32], index: 1, kind: output, shape index: {}]  }
   0x1   :  { %v4_v0 = vld [vmem:[%s22_s0] ss:$0 sm:$0xff] }
   0x2   :  { %5 = vst [vmem:[%s23_s1] sm:$0xf] %v4_v0 }

// kernel: tile.9
= control target key start
LH: loop header
LB: loop body
LE: loop exit
PB: predicated region body
PF: predicated region fallthrough
CT: control target
= control target key end

     0   :  { %s37_s8 = smov 32   ;;  %s38_s9 = smov 64   ;;  %vm7_vm0 = vcmask 261120   ;;  %vm13_vm1 = vcmask 1048320   ;;  %vm19_vm2 = vcmask 785920   ;;  %vm25_vm3 = vcmask 523520   ;;  %s55_s0 = inlined_call_operand.vmem [shape: f32[4,32], index: 0, kind: input, shape index: {}]   ;;  %s56_s1 = inlined_call_operand.vmem [shape: f32[1,128], index: 1, kind: output, shape index: {}]  }
   0x1   :  { %v4_v0 = vld [vmem:[%s55_s0] sm:$0xf]  ;;  %s36_s0 = smov 96  }
   0x2   :  { %5 = vst [vmem:[#allocation1] sm:$0xf] %v4_v0 }
   0x9   :  { %v10_v1 = vld [vmem:[#allocation1 + $0x3] sm:$0x1]   ;;  %v22_v2 = vld [vmem:[#allocation1 + $0x1] sm:$0x1]   ;;  %v16_v3 = vld [vmem:[#allocation1 + $0x2] sm:$0x1]  }
   0xa   :  { %11 = vrot.lane.b32.xlu0 %v10_v1, %s36_s0  ;;  %23 = vrot.lane.b32.xlu1 %v22_v2, %s37_s8  ;;  %v6_v4 = vld [vmem:[#allocation1] sm:$0x1]  }
   0xb   :  { %8 = vst.msk [vmem:[#allocation0] sm:$0x1] %vm7_vm0, %v6_v4  }
  0x12   :  { %17 = vrot.lane.b32.xlu0 %v16_v3, %s38_s9 }
  0x7c   :  { %v12_v5 = vpop.permute.xlu0 %11   ;;  %v24_v6 = vpop.permute.xlu1 %23  }
  0x7d   :  { %14 = vst.msk [vmem:[#allocation0] sm:$0x1] %vm13_vm1, %v12_v5  }
  0x84   :  { %v18_v7 = vpop.permute.xlu0 %17  }
  0x85   :  { %20 = vst.msk [vmem:[#allocation0] sm:$0x1] %vm19_vm2, %v18_v7  }
  0x86   :  { %26 = vst.msk [vmem:[#allocation0] sm:$0x1] %vm25_vm3, %v24_v6  }
  0x8d   :  { %v29_v8 = vld [vmem:[#allocation0] sm:$0x1] }
  0x8e   :  { %32 = vst [vmem:[%s56_s1] sm:$0x1] %v29_v8 }

// kernel: _lambda_.1
= control target key start
LH: loop header
LB: loop body
LE: loop exit
PB: predicated region body
PF: predicated region fallthrough
CT: control target
= control target key end

     0   :  { %s449_s1 = inlined_call_operand.vmem [shape: bf16[256,128], index: 1, kind: input, shape index: {}]   ;;  %s450_s2 = inlined_call_operand.vmem [shape: f32[1,128], index: 2, kind: input, shape index: {}]   ;;  %s451_s0 = inlined_call_operand.vmem [shape: bf16[32,256], index: 0, kind: input, shape index: {}]   ;;  %s452_s3 = inlined_call_operand.vmem [shape: bf16[32,128], index: 3, kind: output, shape index: {}]  }
   0x1   :  { %v311_v0 = vld [vmem:[%s449_s1 + $0x38] sm:$0xff]  ;;  %v310_v2 = vld [vmem:[%s449_s1 + $0x30] sm:$0xff]  ;;  %v309_v4 = vld [vmem:[%s449_s1 + $0x28] sm:$0xff] }
   0x2   :  { %v319_v1 = vld [vmem:[%s449_s1 + $0x78] sm:$0xff]  ;;  %170 = vmatpush.bf16.msra.mxu0 %v311_v0  ;;  %331 = vmatpush.bf16.msra.mxu2 %v311_v0  ;;  %v318_v3 = vld [vmem:[%s449_s1 + $0x70] sm:$0xff]  ;;  %v317_v5 = vld [vmem:[%s449_s1 + $0x68] sm:$0xff] }
   0x3   :  { %189 = vmatpush.bf16.msra.mxu1 %v319_v1  ;;  %339 = vmatpush.bf16.msra.mxu3 %v319_v1  ;;  %v308_v6 = vld [vmem:[%s449_s1 + $0x20] sm:$0xff]  ;;  %v307_v8 = vld [vmem:[%s449_s1 + $0x18] sm:$0xff]  ;;  %v306_v10 = vld [vmem:[%s449_s1 + $0x10] sm:$0xff] }
   0x4   :  { %v316_v7 = vld [vmem:[%s449_s1 + $0x60] sm:$0xff]  ;;  %v315_v9 = vld [vmem:[%s449_s1 + $0x58] sm:$0xff]  ;;  %v314_v11 = vld [vmem:[%s449_s1 + $0x50] sm:$0xff] }
   0x5   :  { %v305_v12 = vld [vmem:[%s449_s1 + $0x8] sm:$0xff]  ;;  %v304_v14 = vld [vmem:[%s449_s1] sm:$0xff]  ;;  %v230_v18 = vld [vmem:[%s451_s0 + $0x10] sm:$0xf] }
   0x6   :  { %171 = vmatpush.bf16.msra.mxu0 %v310_v2  ;;  %332 = vmatpush.bf16.msra.mxu2 %v310_v2  ;;  %v313_v13 = vld [vmem:[%s449_s1 + $0x48] sm:$0xff]  ;;  %v312_v15 = vld [vmem:[%s449_s1 + $0x40] sm:$0xff]  ;;  %v303_v19 = vld [vmem:[%s451_s0 + $0x14] sm:$0xf0] }
   0x7   :  { %190 = vmatpush.bf16.msra.mxu1 %v318_v3  ;;  %340 = vmatpush.bf16.msra.mxu3 %v318_v3  ;;  %v222_v16 = vld [vmem:[%s451_s0] sm:$0xf]  ;;  %v301_v17 = vld [vmem:[%s451_s0 + $0x4] sm:$0xf0]  ;;  %v300_v20 = vld [vmem:[%s451_s0 + $0x4] sm:$0xf]  ;;  %v231_v25 = vor.u32 %v303_v19, %v230_v18 }
   0x8   :  { %v224_v21 = vld [vmem:[%s451_s0 + $0x8] sm:$0xf0]  ;;  %v302_v22 = vld [vmem:[%s451_s0 + $0x14] sm:$0xf]  ;;  %v232_v23 = vld [vmem:[%s451_s0 + $0x18] sm:$0xf0]  ;;  %v223_v24 = vor.u32 %v301_v17, %v222_v16 }
   0x9   :  { %v227_v26 = vor.u32 %v300_v20, %v224_v21  ;;  %v235_v27 = vor.u32 %v302_v22, %v232_v23  ;;  %v347_v30 = vld [vmem:[%s450_s2] ss:$0 sm:$0xff] }
   0xa   :  { %172 = vmatpush.bf16.msra.mxu0 %v309_v4  ;;  %333 = vmatpush.bf16.msra.mxu2 %v309_v4 }
   0xb   :  { %191 = vmatpush.bf16.msra.mxu1 %v317_v5  ;;  %341 = vmatpush.bf16.msra.mxu3 %v317_v5 }
   0xe   :  { %173 = vmatpush.bf16.msra.mxu0 %v308_v6  ;;  %334 = vmatpush.bf16.msra.mxu2 %v308_v6 }
   0xf   :  { %192 = vmatpush.bf16.msra.mxu1 %v316_v7  ;;  %342 = vmatpush.bf16.msra.mxu3 %v316_v7 }
  0x12   :  { %174 = vmatpush.bf16.msra.mxu0 %v307_v8  ;;  %335 = vmatpush.bf16.msra.mxu2 %v307_v8 }
  0x13   :  { %193 = vmatpush.bf16.msra.mxu1 %v315_v9  ;;  %343 = vmatpush.bf16.msra.mxu3 %v315_v9 }
  0x16   :  { %175 = vmatpush.bf16.msra.mxu0 %v306_v10  ;;  %336 = vmatpush.bf16.msra.mxu2 %v306_v10 }
  0x17   :  { %194 = vmatpush.bf16.msra.mxu1 %v314_v11  ;;  %344 = vmatpush.bf16.msra.mxu3 %v314_v11 }
  0x1a   :  { %176 = vmatpush.bf16.msra.mxu0 %v305_v12  ;;  %337 = vmatpush.bf16.msra.mxu2 %v305_v12 }
  0x1b   :  { %195 = vmatpush.bf16.msra.mxu1 %v313_v13  ;;  %345 = vmatpush.bf16.msra.mxu3 %v313_v13 }
  0x1e   :  { %177 = vmatpush.bf16.msra.mxu0 %v304_v14  ;;  %338 = vmatpush.bf16.msra.mxu2 %v304_v14 }
  0x1f   :  { %196 = vmatpush.bf16.msra.mxu1 %v312_v15  ;;  %346 = vmatpush.bf16.msra.mxu3 %v312_v15 }
  0x21   :  { %178 = vmatmul.bf16.vlgmr.msra.gmra.mxu0 %v223_v24  ;;  %183 = vmatmul.bf16.vlgmr.msra.gmra.mxu2 %v231_v25 }
  0x22   :  { %197 = vmatmul.bf16.vlgmr.msra.gmra.mxu1 %v227_v26  ;;  %202 = vmatmul.bf16.vlgmr.msra.gmra.mxu3 %v235_v27 }
  0x9e   :  { %v179_v28 = vpop.f32.mrf.mxu0 }
  0x9f   :  { %v198_v29 = vpop.f32.mrf.mxu1  ;;  %v180_v32 = vadd.f32 %v347_v30, %v179_v28 }
  0xa1   :  { %v199_v37 = vadd.f32 %v198_v29, %v180_v32 }
  0xa4   :  { %v184_v31 = vpop.f32.mrf.mxu2 }
  0xa5   :  { %v203_v33 = vpop.f32.mrf.mxu3  ;;  %v185_v39 = vadd.f32 %v347_v30, %v184_v31 }
  0xa6   :  { %v181_v34 = vpop.f32.mrf.mxu0 }
  0xa7   :  { %v182_v35 = vadd.f32 %v347_v30, %v181_v34  ;;  %v200_v36 = vpop.f32.mrf.mxu1  ;;  %v204_v44 = vadd.f32 %v203_v33, %v185_v39 }
  0xa9   :  { %v201_v38 = vadd.f32 %v200_v36, %v182_v35 }
  0xab   :  { %v323_v40 = vpack.c.bf16 %v201_v38, %v199_v37 }
  0xac   :  { %v186_v41 = vpop.f32.mrf.mxu2 }
  0xad   :  { %324 = vst [vmem:[%s452_s3] sm:$0xff] %v323_v40   ;;  %v187_v42 = vadd.f32 %v347_v30, %v186_v41  ;;  %v205_v43 = vpop.f32.mrf.mxu3 }
  0xaf   :  { %v206_v45 = vadd.f32 %v205_v43, %v187_v42 }
  0xb1   :  { %v328_v46 = vpack.c.bf16 %v206_v45, %v204_v44 }
  0xb3   :  { %330 = vst [vmem:[%s452_s3 + $0x8] sm:$0xff] %v328_v46  }

</bundles_post_ra>
